<compile_context>
chip_gen: v7x
topology: tpu7x:2x2x1
jax: 0.10.0
libtpu: 0.0.40
codegen_flags: <defaults>
</compile_context>

<pallas_src>
import jax
import jax.numpy as jnp
from jax.experimental import pallas as pl
from jax.experimental.pallas import tpu as pltpu


def _mlp_kernel(x_ref,
                w1_ref, b1_ref,
                w2_ref, b2_ref,
                w3_ref, b3_ref,
                w4t_ref, b4_ref,
                o_ref):
    # x_ref: [4, TB] bf16  (features on sublanes, batch on lanes)

    # Linear(4, 64) + ReLU            -> [64, TB]   (bf16 MXU, f32 accumulate)
    h = jnp.dot(w1_ref[...], x_ref[...], preferred_element_type=jnp.float32)
    h = jnp.maximum(h + b1_ref[...], 0.0).astype(jnp.bfloat16)

    # Linear(64, 256) + ReLU          -> [256, TB]
    h = jnp.dot(w2_ref[...], h, preferred_element_type=jnp.float32)
    h = jnp.maximum(h + b2_ref[...], 0.0).astype(jnp.bfloat16)

    # Linear(256, 16) + ReLU          -> [16, TB]   (keep f32: feeds VPU layer)
    h = jnp.dot(w3_ref[...], h, preferred_element_type=jnp.float32)
    h = jnp.maximum(h + b3_ref[...], 0.0)

    # Linear(16, 1) off the MXU: VPU broadcast-multiply + sublane (XLU) reduce.
    # w4t_ref: [16, 1] f32 column, broadcast over the batch lanes.
    z = jnp.sum(w4t_ref[...] * h, axis=0, keepdims=True) + b4_ref[...]

    # Exact sigmoid (EUP exp + one divide on a ~2-vreg tensor).
    o_ref[...] = (1.0 / (1.0 + jnp.exp(-z))).astype(o_ref.dtype)


def _round_up(n, m):
    return ((n + m - 1) // m) * m


def my_old_discriminator(x, params, *, tb=8192):
    """Fused forward pass.

    x:      [B, input_size] float32 (PyTorch layout)
    params: ((w1,b1),...,(w4,b4)) with w: [out, in], b: [out, 1]
    returns [B, output_size] float32
    """
    (w1, b1), (w2, b2), (w3, b3), (w4, b4) = params
    B, F = x.shape
    out_size = w4.shape[0]
    assert out_size == 1, "kernel's VPU/XLU final layer is specialized to output_size=1"

    # Pad the batch only to a lane multiple; the grid handles a partial tail tile.
    Bp = _round_up(B, 128)
    TB = min(_round_up(max(tb, 128), 128), Bp)
    # v7x: guarantee >=2 grid steps so the "parallel" batch axis shards across
    # both TensorCores (harmless on single-TC v5e/v6e).
    if Bp > 128 and pl.cdiv(Bp, TB) == 1:
        TB = _round_up(pl.cdiv(Bp, 2), 128)
    grid = (pl.cdiv(Bp, TB),)

    # Transposed, lane-dense layout; bf16 inputs for the full-rate MXU path.
    xt = jnp.pad(x.T, ((0, 0), (0, Bp - B))).astype(jnp.bfloat16)
    w1b = w1.astype(jnp.bfloat16)
    w2b = w2.astype(jnp.bfloat16)
    w3b = w3.astype(jnp.bfloat16)
    w4t = w4.T.astype(jnp.float32)          # [16, 1] column for the VPU layer
    b1f, b2f, b3f, b4f = (b.astype(jnp.float32) for b in (b1, b2, b3, b4))

    def full(arr):
        # Whole-array block, same block every grid step -> stays VMEM-resident.
        return pl.BlockSpec(arr.shape, lambda i: (0, 0))

    out_t = pl.pallas_call(
        _mlp_kernel,
        out_shape=jax.ShapeDtypeStruct((out_size, Bp), jnp.float32),
        grid=grid,
        in_specs=[
            pl.BlockSpec((F, TB), lambda i: (0, i)),      # x tile, lane-dense
            full(w1b), full(b1f),
            full(w2b), full(b2f),
            full(w3b), full(b3f),
            full(w4t), full(b4f),
        ],
        out_specs=pl.BlockSpec((out_size, TB), lambda i: (0, i)),
        compiler_params=pltpu.CompilerParams(
            dimension_semantics=("parallel",)),
    )(xt, w1b, b1f, w2b, b2f, w3b, b3f, w4t, b4f)

    # Back to PyTorch layout [B, out_size]; dim 0 has size 1 so this transpose
    # is effectively a reshape.
    return out_t[:, :B].T


def init_params(key, input_size=4, output_size=1):
    """Deterministic init matching the module's layer shapes.

    Weights use the PyTorch-native [out, in] layout; biases are [out, 1].
    """
    dims = [(input_size, 64), (64, 256), (256, 16), (16, output_size)]
    params = []
    for (fan_in, fan_out) in dims:
        key, kw, kb = jax.random.split(key, 3)
        bound = 1.0 / jnp.sqrt(jnp.float32(fan_in))
        w = jax.random.uniform(kw, (fan_out, fan_in), jnp.float32, -bound, bound)
        b = jax.random.uniform(kb, (fan_out, 1), jnp.float32, -bound, bound)
        params.append((w, b))
    return params


if __name__ == "__main__":
    key = jax.random.PRNGKey(0)
    key, kx = jax.random.split(key)

    B, INPUT_SIZE, OUTPUT_SIZE = 300, 4, 1   # non-multiple-of-128 B exercises padding
    x = jax.random.normal(kx, (B, INPUT_SIZE), jnp.float32)
    params = init_params(key, INPUT_SIZE, OUTPUT_SIZE)

    # Pure-JAX f32 reference of the module's forward pass.
    def ref(x, params):
        h = x
        for i, (w, b) in enumerate(params):
            h = h @ w.T + b[:, 0]
            if i < len(params) - 1:
                h = jnp.maximum(h, 0.0)
        return jax.nn.sigmoid(h)

    expected = ref(x, params)

    # Small tile: multi-step grid with evenly dividing blocks.
    out_small = my_old_discriminator(x, params, tb=128)
    jax.block_until_ready(out_small)

    # Default tile: v7x two-step cap kicks in (TB=256 for Bp=384) and the
    # trailing block is partial, exercising masked writes.
    out_default = my_old_discriminator(x, params)
    jax.block_until_ready(out_default)

    for out in (out_small, out_default):
        assert out.shape == (B, OUTPUT_SIZE)
        # bf16 MXU inputs with f32 accumulation: ~1e-2-level agreement expected.
        assert jnp.allclose(out, expected, atol=2e-2, rtol=2e-2), (
            float(jnp.max(jnp.abs(out - expected))))

    print("KERNEL_OK")
</pallas_src>

<mosaic_0001>
module attributes {stable_mosaic.version = 11 : i64} {
  func.func @_mlp_kernel(%arg0: i32, %arg1: memref<4x128xbf16, #tpu.memory_space<vmem>>, %arg2: memref<64x4xbf16, #tpu.memory_space<vmem>>, %arg3: memref<64x1xf32, #tpu.memory_space<vmem>>, %arg4: memref<256x64xbf16, #tpu.memory_space<vmem>>, %arg5: memref<256x1xf32, #tpu.memory_space<vmem>>, %arg6: memref<16x256xbf16, #tpu.memory_space<vmem>>, %arg7: memref<16x1xf32, #tpu.memory_space<vmem>>, %arg8: memref<16x1xf32, #tpu.memory_space<vmem>>, %arg9: memref<1x1xf32, #tpu.memory_space<vmem>>, %arg10: memref<1x128xf32, #tpu.memory_space<vmem>>) attributes {dimension_semantics = [#tpu.dimension_semantics<parallel>], iteration_bounds = array<i64: 3>, scalar_prefetch = 0 : i64, scratch_operands = 0 : i64, tpu.core_type = #tpu.core_type<tc>, window_params = [{transform_indices = @transform_0, window_bounds = array<i64: 4, 128>}, {pipeline_mode = #tpu.pipeline_mode<synchronous>, transform_indices = @transform_1, window_bounds = array<i64: 64, 4>}, {pipeline_mode = #tpu.pipeline_mode<synchronous>, transform_indices = @transform_2, window_bounds = array<i64: 64, 1>}, {pipeline_mode = #tpu.pipeline_mode<synchronous>, transform_indices = @transform_3, window_bounds = array<i64: 256, 64>}, {pipeline_mode = #tpu.pipeline_mode<synchronous>, transform_indices = @transform_4, window_bounds = array<i64: 256, 1>}, {pipeline_mode = #tpu.pipeline_mode<synchronous>, transform_indices = @transform_5, window_bounds = array<i64: 16, 256>}, {pipeline_mode = #tpu.pipeline_mode<synchronous>, transform_indices = @transform_6, window_bounds = array<i64: 16, 1>}, {pipeline_mode = #tpu.pipeline_mode<synchronous>, transform_indices = @transform_7, window_bounds = array<i64: 16, 1>}, {pipeline_mode = #tpu.pipeline_mode<synchronous>, transform_indices = @transform_8, window_bounds = array<i64: 1, 1>}, {transform_indices = @transform_9, window_bounds = array<i64: 1, 128>}]} {
    %c0 = arith.constant 0 : index
    %c0_0 = arith.constant 0 : index
    %0 = vector.load %arg2[%c0, %c0_0] : memref<64x4xbf16, #tpu.memory_space<vmem>>, vector<64x4xbf16>
    %c0_1 = arith.constant 0 : index
    %c0_2 = arith.constant 0 : index
    %1 = vector.load %arg1[%c0_1, %c0_2] : memref<4x128xbf16, #tpu.memory_space<vmem>>, vector<4x128xbf16>
    %cst = arith.constant dense<0.000000e+00> : vector<64x128xf32>
    %2 = tpu.matmul %0, %1, %cst {dimension_numbers = #tpu.dot_dimension_numbers<[1], [0], [0], [1], [0, 0, 1, 1], [], []>} : vector<64x4xbf16>, vector<4x128xbf16>, vector<64x128xf32> -> vector<64x128xf32>
    %c0_3 = arith.constant 0 : index
    %c0_4 = arith.constant 0 : index
    %3 = vector.load %arg3[%c0_3, %c0_4] : memref<64x1xf32, #tpu.memory_space<vmem>>, vector<64x1xf32>
    %4 = vector.broadcast %3 : vector<64x1xf32> to vector<64x128xf32>
    %5 = arith.addf %2, %4 : vector<64x128xf32>
    %cst_5 = arith.constant 0.000000e+00 : f32
    %6 = vector.broadcast %cst_5 : f32 to vector<64x128xf32>
    %7 = arith.maximumf %5, %6 : vector<64x128xf32>
    %8 = arith.truncf %7 : vector<64x128xf32> to vector<64x128xbf16>
    %c0_6 = arith.constant 0 : index
    %c0_7 = arith.constant 0 : index
    %9 = vector.load %arg4[%c0_6, %c0_7] : memref<256x64xbf16, #tpu.memory_space<vmem>>, vector<256x64xbf16>
    %cst_8 = arith.constant dense<0.000000e+00> : vector<256x128xf32>
    %10 = tpu.matmul %9, %8, %cst_8 {dimension_numbers = #tpu.dot_dimension_numbers<[1], [0], [0], [1], [0, 0, 1, 1], [], []>} : vector<256x64xbf16>, vector<64x128xbf16>, vector<256x128xf32> -> vector<256x128xf32>
    %c0_9 = arith.constant 0 : index
    %c0_10 = arith.constant 0 : index
    %11 = vector.load %arg5[%c0_9, %c0_10] : memref<256x1xf32, #tpu.memory_space<vmem>>, vector<256x1xf32>
    %12 = vector.broadcast %11 : vector<256x1xf32> to vector<256x128xf32>
    %13 = arith.addf %10, %12 : vector<256x128xf32>
    %cst_11 = arith.constant 0.000000e+00 : f32
    %14 = vector.broadcast %cst_11 : f32 to vector<256x128xf32>
    %15 = arith.maximumf %13, %14 : vector<256x128xf32>
    %16 = arith.truncf %15 : vector<256x128xf32> to vector<256x128xbf16>
    %c0_12 = arith.constant 0 : index
    %c0_13 = arith.constant 0 : index
    %17 = vector.load %arg6[%c0_12, %c0_13] : memref<16x256xbf16, #tpu.memory_space<vmem>>, vector<16x256xbf16>
    %cst_14 = arith.constant dense<0.000000e+00> : vector<16x128xf32>
    %18 = tpu.matmul %17, %16, %cst_14 {dimension_numbers = #tpu.dot_dimension_numbers<[1], [0], [0], [1], [0, 0, 1, 1], [], []>} : vector<16x256xbf16>, vector<256x128xbf16>, vector<16x128xf32> -> vector<16x128xf32>
    %c0_15 = arith.constant 0 : index
    %c0_16 = arith.constant 0 : index
    %19 = vector.load %arg7[%c0_15, %c0_16] : memref<16x1xf32, #tpu.memory_space<vmem>>, vector<16x1xf32>
    %20 = vector.broadcast %19 : vector<16x1xf32> to vector<16x128xf32>
    %21 = arith.addf %18, %20 : vector<16x128xf32>
    %cst_17 = arith.constant 0.000000e+00 : f32
    %22 = vector.broadcast %cst_17 : f32 to vector<16x128xf32>
    %23 = arith.maximumf %21, %22 : vector<16x128xf32>
    %c0_18 = arith.constant 0 : index
    %c0_19 = arith.constant 0 : index
    %24 = vector.load %arg8[%c0_18, %c0_19] : memref<16x1xf32, #tpu.memory_space<vmem>>, vector<16x1xf32>
    %25 = vector.broadcast %24 : vector<16x1xf32> to vector<16x128xf32>
    %26 = arith.mulf %25, %23 : vector<16x128xf32>
    %cst_20 = arith.constant dense<0.000000e+00> : vector<128xf32>
    %27 = vector.multi_reduction <add>, %26, %cst_20 [0] : vector<16x128xf32> to vector<128xf32>
    %28 = vector.shape_cast %27 : vector<128xf32> to vector<1x128xf32>
    %c0_21 = arith.constant 0 : index
    %c0_22 = arith.constant 0 : index
    %29 = vector.load %arg9[%c0_21, %c0_22] : memref<1x1xf32, #tpu.memory_space<vmem>>, vector<1x1xf32>
    %30 = vector.broadcast %29 : vector<1x1xf32> to vector<1x128xf32>
    %31 = arith.addf %28, %30 : vector<1x128xf32>
    %cst_23 = arith.constant 0.000000e+00 : f32
    %32 = vector.broadcast %cst_23 : f32 to vector<1x128xf32>
    %33 = arith.subf %32, %31 : vector<1x128xf32>
    %34 = math.exp %33 : vector<1x128xf32>
    %cst_24 = arith.constant 1.000000e+00 : f32
    %35 = vector.broadcast %cst_24 : f32 to vector<1x128xf32>
    %36 = arith.addf %35, %34 : vector<1x128xf32>
    %cst_25 = arith.constant 1.000000e+00 : f32
    %37 = vector.broadcast %cst_25 : f32 to vector<1x128xf32>
    %38 = arith.divf %37, %36 : vector<1x128xf32>
    %c0_26 = arith.constant 0 : index
    %c0_27 = arith.constant 0 : index
    %39 = vector.load %arg10[%c0_26, %c0_27] : memref<1x128xf32, #tpu.memory_space<vmem>>, vector<1x128xf32>
    tpu.vector_store %arg10[%c0_26, %c0_27], %38 {strides = array<i32>} : memref<1x128xf32, #tpu.memory_space<vmem>>, vector<1x128xf32>,
    return
  }
  func.func @transform_0(%arg0: i32) -> (i32, i32) {
    %c0_i32 = arith.constant 0 : i32
    %c0_i32_0 = arith.constant 0 : i32
    return %c0_i32, %arg0 : i32, i32
  }
  func.func @transform_1(%arg0: i32) -> (i32, i32) {
    %c0_i32 = arith.constant 0 : i32
    %c0_i32_0 = arith.constant 0 : i32
    %c0_i32_1 = arith.constant 0 : i32
    return %c0_i32, %c0_i32_0 : i32, i32
  }
  func.func @transform_2(%arg0: i32) -> (i32, i32) {
    %c0_i32 = arith.constant 0 : i32
    %c0_i32_0 = arith.constant 0 : i32
    %c0_i32_1 = arith.constant 0 : i32
    return %c0_i32, %c0_i32_0 : i32, i32
  }
  func.func @transform_3(%arg0: i32) -> (i32, i32) {
    %c0_i32 = arith.constant 0 : i32
    %c0_i32_0 = arith.constant 0 : i32
    %c0_i32_1 = arith.constant 0 : i32
    return %c0_i32, %c0_i32_0 : i32, i32
  }
  func.func @transform_4(%arg0: i32) -> (i32, i32) {
    %c0_i32 = arith.constant 0 : i32
    %c0_i32_0 = arith.constant 0 : i32
    %c0_i32_1 = arith.constant 0 : i32
    return %c0_i32, %c0_i32_0 : i32, i32
  }
  func.func @transform_5(%arg0: i32) -> (i32, i32) {
    %c0_i32 = arith.constant 0 : i32
    %c0_i32_0 = arith.constant 0 : i32
    %c0_i32_1 = arith.constant 0 : i32
    return %c0_i32, %c0_i32_0 : i32, i32
  }
  func.func @transform_6(%arg0: i32) -> (i32, i32) {
    %c0_i32 = arith.constant 0 : i32
    %c0_i32_0 = arith.constant 0 : i32
    %c0_i32_1 = arith.constant 0 : i32
    return %c0_i32, %c0_i32_0 : i32, i32
  }
  func.func @transform_7(%arg0: i32) -> (i32, i32) {
    %c0_i32 = arith.constant 0 : i32
    %c0_i32_0 = arith.constant 0 : i32
    %c0_i32_1 = arith.constant 0 : i32
    return %c0_i32, %c0_i32_0 : i32, i32
  }
  func.func @transform_8(%arg0: i32) -> (i32, i32) {
    %c0_i32 = arith.constant 0 : i32
    %c0_i32_0 = arith.constant 0 : i32
    %c0_i32_1 = arith.constant 0 : i32
    return %c0_i32, %c0_i32_0 : i32, i32
  }
  func.func @transform_9(%arg0: i32) -> (i32, i32) {
    %c0_i32 = arith.constant 0 : i32
    %c0_i32_0 = arith.constant 0 : i32
    return %c0_i32, %arg0 : i32, i32
  }
}

</mosaic_0001>

<bundles_post_ra>
// kernel: tpu_custom_call.1
= control target key start
LH: loop header
LB: loop body
LE: loop exit
PB: predicated region body
PF: predicated region fallthrough
CT: control target
= control target key end

     0   :  { %s1963_s0 = inlined_call_operand.vmem [shape: bf16[4,384], index: 0, kind: input, shape index: {}]   ;;  %s1964_s1 = inlined_call_operand.vmem [shape: bf16[64,4], index: 1, kind: input, shape index: {}]   ;;  %s1965_s2 = inlined_call_operand.vmem [shape: f32[64,1], index: 2, kind: input, shape index: {}]   ;;  %s1966_s3 = inlined_call_operand.vmem [shape: bf16[256,64], index: 3, kind: input, shape index: {}]   ;;  %s1967_s4 = inlined_call_operand.vmem [shape: f32[256,1], index: 4, kind: input, shape index: {}]   ;;  %s1968_s5 = inlined_call_operand.vmem [shape: bf16[16,256], index: 5, kind: input, shape index: {}]   ;;  %s1969_s6 = inlined_call_operand.vmem [shape: f32[16,1], index: 6, kind: input, shape index: {}]   ;;  %s1970_s7 = inlined_call_operand.vmem [shape: f32[16,1], index: 7, kind: input, shape index: {}]   ;;  %s1971_s8 = inlined_call_operand.<no memory space> [shape: f32[1,1], index: 8, kind: input, shape index: {}]   ;;  %s1972_s9 = inlined_call_operand.hbm [shape: f32[1,384], index: 9, kind: output, shape index: {}]  }
   0x1   :  { %v14_v0 = vstv %s1971_s8 }
   0x2   :  { %15 = vst [vmem:[#allocation2] sm:$0x1] %v14_v0 }
   0x3   :  { %16 = vsyncpa [#allocation4], 0 }
   0x4   :  { %18 = vsyncpa [#allocation4 + $0x1], 0  ;;  %s1573_s11 = smov 0   ;;  %s1575_s12 = smov 0  }
   0x5   :  { %s1577_s13 = smov 0   ;;  %s1579_s14 = smov 0  }
   0x6 LB: > { %s1594_s8 = sadd.s32 4294967295, %s1516_s14   ;;  %s1237_s15 = sadd.s32 4294967294, %s1516_s14   ;;  %s1516_s14 = sphi %s1579_s14, %s1978_s14   ;;  %s1512_s13 = sphi %s1577_s13, %s1977_s13   ;;  %s1508_s12 = sphi %s1575_s12, %s1976_s12   ;;  %s1504_s11 = sphi %s1573_s11, %s1975_s11  }
   0x7   : > { %s1598_s16 = sadd.s32 1, %s1516_s14   ;;  %s225_s17 = sadd.s32 1, %s1512_s13 }
   0x8   : > { %s222_s18 = ssub.s32 %s1516_s14, %s1598_s16  ;;  %p235_p0 = scmp.ne.s32.totalorder %s1512_s13, %s1508_s12 }
   0x9   : > { %p223_p1 = scmp.eq.s32.totalorder %s222_s18, 0  ;;  %p236_p2 = scmp.eq.s32.totalorder %s1594_s8, 2 }
   0xa   : > { %p241_p3 = scmp.ne.s32.totalorder %s1508_s12, %s1504_s11  ;;  %p242_p4 = scmp.eq.s32.totalorder %s1237_s15, 2 }
   0xb   : > { %s1609_s19 = scalar_select %p223_p1, %s1512_s13, %s225_s17  }
   0xc   : > { %p1611_p5 = por %p236_p2, %p235_p0  ;;  %p1615_p6 = por %p242_p4, %p241_p3 }
   0xd   : > { %p1240_p7 = scmp.ge.s32.totalorder %s1516_s14, 1  ;;  %p291_p8 = scmp.lt.s32.totalorder %s1516_s14, 4 }
   0xf   : > { %p292_p9 = pnand %p1240_p7, %p291_p8 }
  0x10   : > { %v339_v1 = vld [vmem:[%s1965_s2] sm:$0xff] (!%p292_p9)  ;;  %p325_p10 = scmp.lt.s32.totalorder (!%p292_p9), %s1594_s8, 2  ;;  %v1518_v3 = vmov (!%p292_p9), 0   ;;  %vm407_vm0 = vcmask (!%p292_p9), 31744   ;;  %v341_v4 = vld [vmem:[%s1965_s2 + $0x10] sm:$0xff] (!%p292_p9)  ;;  %vm420_vm1 = vcmask (!%p292_p9), 1041408  }
  0x11   : > { %295 = sbr.rel (%p292_p9) target bundleno = 836 (0x344), region = 56  ;;  %v1427_v2 = vld [vmem:[%s1964_s1] sm:$0xff] (!%p292_p9)   ;;  %1425 = vset.pattern.permute.xlu0 (!%p292_p9), %v1518_v3  ;;  %1426 = vset.pattern.permute.xlu1 (!%p292_p9), %v1518_v3  ;;  %v340_v5 = vld [vmem:[%s1965_s2 + $0x8] sm:$0xff] (!%p292_p9)  ;;  %v342_v6 = vld [vmem:[%s1965_s2 + $0x18] sm:$0xff] (!%p292_p9)  ;;  %vm805_vm2 = vcmask (!%p292_p9), 523264   ;;  %s323_s29 = sand.u32 (!%p292_p9), 1, %s1508_s12  }
  0x12   : > { %349 = vperm.xlu0 (!%p292_p9), %1425, %v339_v1   ;;  %1336 = vmatprep.mubr.msk.bf16.mxu0 (!%p292_p9), %vm407_vm0, %v1427_v2  ;;  %v1428_v9 = vld [vmem:[%s1964_s1 + $0x8] sm:$0xff] (!%p292_p9)   ;;  %v343_v10 = vld [vmem:[%s1965_s2 + $0x20] sm:$0xff] (!%p292_p9)  ;;  %v1429_v11 = vld [vmem:[%s1964_s1 + $0x10] sm:$0xff] (!%p292_p9)   ;;  %s1284_s30 = sshll.u32 (!%p292_p9), %s1594_s8, 4 }
  0x13   : > { %359 = vperm.xlu1 (!%p292_p9), %1426, %v341_v4   ;;  %v344_v12 = vld [vmem:[%s1965_s2 + $0x28] sm:$0xff] (!%p292_p9)  ;;  %v345_v13 = vld [vmem:[%s1965_s2 + $0x30] sm:$0xff] (!%p292_p9)  ;;  %v346_v14 = vld [vmem:[%s1965_s2 + $0x38] sm:$0xff] (!%p292_p9)  ;;  %s1921_s22 = scalar_lea.hbm (!%p292_p9), %s1972_s9, %s1284_s30 }
  0x14   : > { %v1430_v15 = vld [vmem:[%s1964_s1 + $0x18] sm:$0xff] (!%p292_p9)   ;;  %v549_v16 = vld [vmem:[%s1967_s4 + $0x80] sm:$0xff] (!%p292_p9)  ;;  %v550_v17 = vld [vmem:[%s1967_s4 + $0x88] sm:$0xff] (!%p292_p9) }
  0x15   : > { %v533_v18 = vld [vmem:[%s1967_s4] sm:$0xff] (!%p292_p9)  ;;  %v534_v19 = vld [vmem:[%s1967_s4 + $0x8] sm:$0xff] (!%p292_p9)  ;;  %v551_v20 = vld [vmem:[%s1967_s4 + $0x90] sm:$0xff] (!%p292_p9) }
  0x16   : > { %354 = vperm.xlu0 (!%p292_p9), %1425, %v340_v5   ;;  %v552_v21 = vld [vmem:[%s1967_s4 + $0x98] sm:$0xff] (!%p292_p9)  ;;  %v535_v22 = vld [vmem:[%s1967_s4 + $0x10] sm:$0xff] (!%p292_p9)  ;;  %v553_v24 = vld [vmem:[%s1967_s4 + $0xa0] sm:$0xff] (!%p292_p9) }
  0x17   : > { %364 = vperm.xlu1 (!%p292_p9), %1426, %v342_v6   ;;  %v536_v23 = vld [vmem:[%s1967_s4 + $0x18] sm:$0xff] (!%p292_p9)  ;;  %v554_v25 = vld [vmem:[%s1967_s4 + $0xa8] sm:$0xff] (!%p292_p9)  ;;  %v537_v26 = vld [vmem:[%s1967_s4 + $0x20] sm:$0xff] (!%p292_p9) }
  0x18   : > { %s326_s26 = scalar_select %p325_p10, %s1594_s8, 2  ;;  %v538_v27 = vld [vmem:[%s1967_s4 + $0x28] sm:$0xff]  ;;  %v555_v28 = vld [vmem:[%s1967_s4 + $0xb0] sm:$0xff]  ;;  %v556_v29 = vld [vmem:[%s1967_s4 + $0xb8] sm:$0xff] }
  0x19   : > { %v539_v30 = vld [vmem:[%s1967_s4 + $0x30] sm:$0xff]  ;;  %v540_v31 = vld [vmem:[%s1967_s4 + $0x38] sm:$0xff]  ;;  %v557_v32 = vld [vmem:[%s1967_s4 + $0xc0] sm:$0xff]  ;;  %s1519_s8 = smov [#allocation3]  }
  0x1a   : > { %s1241_s10 = sshll.u32 %s326_s26, 1  ;;  %369 = vperm.xlu0 %1425, %v343_v10   ;;  %v558_v33 = vld [vmem:[%s1967_s4 + $0xc8] sm:$0xff]  ;;  %v541_v34 = vld [vmem:[%s1967_s4 + $0x40] sm:$0xff]  ;;  %v559_v36 = vld [vmem:[%s1967_s4 + $0xd0] sm:$0xff]  ;;  %s1458_s25 = sshll.u32 %s1519_s8, 4  ;;  %s1459_s25 = int_to_ptr.vmem [resolvable:$false] %s1458_s25 }
  0x1b   : > { %s328_s23 = scalar_lea.vmem %s1963_s0, %s1241_s10  ;;  %374 = vperm.xlu1 %1426, %v344_v12   ;;  %v542_v35 = vld [vmem:[%s1967_s4 + $0x48] sm:$0xff]  ;;  %v560_v37 = vld [vmem:[%s1967_s4 + $0xd8] sm:$0xff]  ;;  %v543_v38 = vld [vmem:[%s1967_s4 + $0x50] sm:$0xff]  ;;  %s324_s10 = scalar_lea.vmem [#allocation3], %s323_s29 }
  0x1c   : > { %v338_v7 = vld [vmem:[%s328_s23] sm:$0x3]  ;;  %v544_v39 = vld [vmem:[%s1967_s4 + $0x58] sm:$0xff]  ;;  %v562_v41 = vld [vmem:[%s1967_s4 + $0xe8] sm:$0xff]  ;;  %s1182_s15 = sshll.u32 %s324_s10, 4  ;;  %s1170_s23 = scalar_lea.sflag [#allocation4], %s323_s29  ;;  %s1923_s15 = int_to_ptr.vmem [resolvable:$true] %s1182_s15 }
  0x1d   : > { %1384 = vmatprep.subr.msk.bf16.mxu0 %vm420_vm1, %v338_v7  ;;  %v422_v8 = vsel %vm420_vm1, %v338_v7, 0  ;;  %v561_v40 = vld [vmem:[%s1967_s4 + $0xe0] sm:$0xff]  ;;  %v546_v43 = vld [vmem:[%s1967_s4 + $0x68] sm:$0xff]  ;;  %v563_v44 = vld [vmem:[%s1967_s4 + $0xf0] sm:$0xff]  ;;  %s1454_s24 = scalar_lea.vmem %s1923_s15, 16  ;;  %s1460_s27 = scalar_lea.vmem %s1459_s25, 32 }
  0x1e   : > { %1335 = vmatpush3.bf16.msra.mxu0 %v422_v8  ;;  %379 = vperm.xlu0 %1425, %v345_v13   ;;  %v545_v42 = vld [vmem:[%s1967_s4 + $0x60] sm:$0xff]  ;;  %v564_v45 = vld [vmem:[%s1967_s4 + $0xf8] sm:$0xff]  ;;  %v547_v46 = vld [vmem:[%s1967_s4 + $0x70] sm:$0xff]  ;;  %p1455_p11 = scmp.ne.s32.totalorder %s1923_s15, %s1454_s24  ;;  %p1461_p0 = scmp.lt.s32.totalorder %s1923_s15, %s1459_s25 }
  0x1f   : > { %384 = vperm.xlu1 %1426, %v346_v14   ;;  %v548_v47 = vld [vmem:[%s1967_s4 + $0x78] sm:$0xff]  ;;  %v1065_v48 = vld [vmem:[%s1969_s6] sm:$0xff]  ;;  %v1066_v49 = vld [vmem:[%s1969_s6 + $0x8] sm:$0xff]  ;;  %p1462_p1 = scmp.lt.s32.totalorder %s1460_s27, %s1454_s24 }
  0x20   : > { %v1130_v50 = vld [vmem:[%s1970_s7] sm:$0xff]  ;;  %v1131_v51 = vld [vmem:[%s1970_s7 + $0x8] sm:$0xff]  ;;  %p1456_p12 = pnand %p1455_p11, %p1611_p5 }
  0x21   : > { %1337 = vmatmul.mubr.msk.bf16.vlgmr.msra.gmra.mrb[0].mxu0 %vm407_vm0, %v1428_v9  ;;  %v1151_v52 = vld [vmem:[#allocation2] sm:$0x1]  ;;  %p1463_p2 = por %p1462_p1, %p1461_p0 }
  0x22   : > { %1340 = vmatprep.mubr.msk.bf16.mxu0 %vm407_vm0, %v1429_v11  ;;  %647 = vperm.xlu0 %1425, %v549_v16   ;;  %v1431_v53 = vld [vmem:[%s1966_s3] sm:$0xff]   ;;  %p1457_p13 = pneg %p1456_p12 }
  0x23   : > { %652 = vperm.xlu1 %1426, %v550_v17   ;;  %1352 = vmatprep.mubr.msk.bf16.mxu1 %vm805_vm2, %v1431_v53 }
  0x24   : > { %p1464_p3 = pnand %p1463_p2, %p1457_p13 }
  0x26   : > { %567 = vperm.xlu0 %1425, %v533_v18  }
  0x27   : > { %572 = vperm.xlu1 %1426, %v534_v19  }
  0x29   : > { %1341 = vmatmul.mubr.msk.bf16.gmra.mrb[4].mxu0 %vm407_vm0, %v1430_v15 }
  0x2a   : > { %657 = vperm.xlu0 %1425, %v551_v20  }
  0x2b   : > { %662 = vperm.xlu1 %1426, %v552_v21  }
  0x2e   : > { %577 = vperm.xlu0 %1425, %v535_v22  }
  0x2f   : > { %582 = vperm.xlu1 %1426, %v536_v23  }
  0x32   : > { %667 = vperm.xlu0 %1425, %v553_v24  }
  0x33   : > { %672 = vperm.xlu1 %1426, %v554_v25  }
  0x36   : > { %587 = vperm.xlu0 %1425, %v537_v26   ;;  %v1432_v26 = vld [vmem:[%s1966_s3 + $0x8] sm:$0xff]  }
  0x37   : > { %592 = vperm.xlu1 %1426, %v538_v27   ;;  %v1433_v27 = vld [vmem:[%s1966_s3 + $0x10] sm:$0xff]  }
  0x3a   : > { %677 = vperm.xlu0 %1425, %v555_v28   ;;  %v1434_v28 = vld [vmem:[%s1966_s3 + $0x18] sm:$0xff]  }
  0x3b   : > { %682 = vperm.xlu1 %1426, %v556_v29   ;;  %v1435_v29 = vld [vmem:[%s1966_s3 + $0x20] sm:$0xff]  }
  0x3e   : > { %597 = vperm.xlu0 %1425, %v539_v30   ;;  %v1436_v30 = vld [vmem:[%s1966_s3 + $0x28] sm:$0xff]  }
  0x3f   : > { %602 = vperm.xlu1 %1426, %v540_v31   ;;  %v1437_v31 = vld [vmem:[%s1966_s3 + $0x30] sm:$0xff]  }
  0x42   : > { %687 = vperm.xlu0 %1425, %v557_v32   ;;  %v1438_v32 = vld [vmem:[%s1966_s3 + $0x38] sm:$0xff]  }
  0x43   : > { %692 = vperm.xlu1 %1426, %v558_v33   ;;  %v1439_v33 = vld [vmem:[%s1966_s3 + $0x40] sm:$0xff]  }
  0x46   : > { %607 = vperm.xlu0 %1425, %v541_v34   ;;  %v1440_v34 = vld [vmem:[%s1966_s3 + $0x48] sm:$0xff]  }
  0x47   : > { %612 = vperm.xlu1 %1426, %v542_v35   ;;  %v1441_v35 = vld [vmem:[%s1966_s3 + $0x50] sm:$0xff]  }
  0x4a   : > { %697 = vperm.xlu0 %1425, %v559_v36   ;;  %v1442_v36 = vld [vmem:[%s1966_s3 + $0x58] sm:$0xff]  }
  0x4b   : > { %702 = vperm.xlu1 %1426, %v560_v37   ;;  %v1443_v37 = vld [vmem:[%s1966_s3 + $0x60] sm:$0xff]  }
  0x4e   : > { %617 = vperm.xlu0 %1425, %v543_v38   ;;  %v1444_v38 = vld [vmem:[%s1966_s3 + $0x68] sm:$0xff]  }
  0x4f   : > { %622 = vperm.xlu1 %1426, %v544_v39   ;;  %v1445_v39 = vld [vmem:[%s1966_s3 + $0x70] sm:$0xff]  }
  0x52   : > { %707 = vperm.xlu0 %1425, %v561_v40   ;;  %v1446_v40 = vld [vmem:[%s1966_s3 + $0x78] sm:$0xff]  }
  0x53   : > { %712 = vperm.xlu1 %1426, %v562_v41  }
  0x56   : > { %627 = vperm.xlu0 %1425, %v545_v42  }
  0x57   : > { %632 = vperm.xlu1 %1426, %v546_v43  }
  0x5a   : > { %717 = vperm.xlu0 %1425, %v563_v44  }
  0x5b   : > { %722 = vperm.xlu1 %1426, %v564_v45   ;;  %v1449_v45 = vld [vmem:[%s1968_s5 + $0x4] ss:$8 sps:$4 sm:$0xff]  }
  0x5c   : > { %1119 = vmatprep.mubr.bf16.mxu0 %v1449_v45 }
  0x5e   : > { %637 = vperm.xlu0 %1425, %v547_v46  }
  0x5f   : > { %642 = vperm.xlu1 %1426, %v548_v47  }
  0x62   : > { %1069 = vperm.xlu0 %1425, %v1065_v48  }
  0x63   : > { %1074 = vperm.xlu1 %1426, %v1066_v49  }
  0x66   : > { %1134 = vperm.xlu0 %1425, %v1130_v50  }
  0x67   : > { %1139 = vperm.xlu1 %1426, %v1131_v51  }
  0x6a   : > { %1154 = vperm.xlu0 %1425, %v1151_v52  }
  0x91   : > { %v350_v54 = vpop.permute.xlu0 %349 }
  0x92   : > { %v360_v55 = vpop.permute.xlu1 %359 }
  0x95   : > { %v355_v56 = vpop.permute.xlu0 %354 }
  0x96   : > { %v365_v57 = vpop.permute.xlu1 %364 }
  0x99   : > { %v370_v61 = vpop.permute.xlu0 %369 }
  0x9a   : > { %v375_v2 = vpop.permute.xlu1 %374 }
  0x9d   : > { %v380_v9 = vpop.permute.xlu0 %379 }
  0x9e   : > { %v385_v14 = vpop.permute.xlu1 %384 }
  0xa1   : > { %v1838_v41 = vpop.permute.xlu0 %647 }
  0xa2   : > { %v1840_v42 = vpop.permute.xlu1 %652 }
  0xa5   : > { %v568_v43 = vpop.permute.xlu0 %567 }
  0xa6   : > { %v573_v44 = vpop.permute.xlu1 %572 }
  0xa9   : > { %v1845_v46 = vpop.permute.xlu0 %657 }
  0xaa   : > { %v1847_v47 = vpop.permute.xlu1 %662 }
  0xad   : > { %v578_v48 = vpop.permute.xlu0 %577 }
  0xae   : > { %v583_v49 = vpop.permute.xlu1 %582 }
  0xb1   : > { %v1849_v50 = vpop.permute.xlu0 %667 }
  0xb2   : > { %v1851_v51 = vpop.permute.xlu1 %672 }
  0xb5   : > { %v588_v52 = vpop.permute.xlu0 %587 }
  0xb6   : > { %v593_v53 = vpop.permute.xlu1 %592 }
  0xf4   : > { %v1338_v58 = vpop.f32.mrb[0].mxu0 }
  0xf5   : > { %v467_v59 = vadd.f32 %v1338_v58, %v360_v55  ;;  %v458_v60 = vpop.f32.mrb[1].mxu0  ;;  %v1855_v55 = vpop.permute.xlu1 %682 }
  0xf6   : > { %v459_v62 = vadd.f32 %v458_v60, %v350_v54  ;;  %v1339_v63 = vpop.f32.mrb[2].mxu0  ;;  %v1853_v54 = vpop.permute.xlu0 %677 }
  0xf7   : > { %v470_v0 = vadd.f32 %v1339_v63, %v365_v57  ;;  %v461_v1 = vpop.f32.mrb[3].mxu0  ;;  %v491_v4 = vmax.f32 %v467_v59, 0.0 }
  0xf8   : > { %v462_v3 = vadd.f32 %v461_v1, %v355_v56  ;;  %v489_v6 = vmax.f32 %v459_v62, 0.0 }
  0xf9   : > { %v492_v5 = vmax.f32 %v470_v0, 0.0  ;;  %v603_v57 = vpop.permute.xlu1 %602 }
  0xfa   : > { %v490_v7 = vmax.f32 %v462_v3, 0.0  ;;  %v598_v56 = vpop.permute.xlu0 %597 }
  0xfb   : > { %v498_v8 = vpack.c.bf16 %v492_v5, %v491_v4 }
  0xfc   : > { %v1342_v10 = vpop.f32.mrb[4].mxu0  ;;  %v497_v11 = vpack.c.bf16 %v490_v7, %v489_v6 }
  0xfd   : > { %v483_v12 = vadd.f32 %v1342_v10, %v380_v9  ;;  %v474_v13 = vpop.f32.mrb[5].mxu0  ;;  %v1859_v59 = vpop.permute.xlu1 %692 }
  0xfe   : > { %v475_v15 = vadd.f32 %v474_v13, %v370_v61  ;;  %v1343_v16 = vpop.f32.mrb[6].mxu0  ;;  %1344 = vmatprep.subr.bf16.mxu1 %v497_v11  ;;  %v1857_v58 = vpop.permute.xlu0 %687 }
  0xff   : > { %v486_v17 = vadd.f32 %v1343_v16, %v385_v14  ;;  %v477_v18 = vpop.f32.mrb[7].mxu0  ;;  %1345 = vmatpush3.bf16.msra.mxu1 %v497_v11  ;;  %v495_v20 = vmax.f32 %v483_v12, 0.0 }
 0x100   : > { %v478_v19 = vadd.f32 %v477_v18, %v375_v2  ;;  %1346 = vmatprep.subr.bf16.mxu1 %v498_v8  ;;  %v493_v22 = vmax.f32 %v475_v15, 0.0 }
 0x101   : > { %v496_v21 = vmax.f32 %v486_v17, 0.0  ;;  %v613_v61 = vpop.permute.xlu1 %612 }
 0x102   : > { %v494_v23 = vmax.f32 %v478_v19, 0.0  ;;  %v608_v60 = vpop.permute.xlu0 %607 }
 0x103   : > { %v500_v24 = vpack.c.bf16 %v496_v21, %v495_v20  ;;  %1347 = vmatpush3.bf16.msra.mxu1 %v498_v8 }
 0x104   : > { %v499_v25 = vpack.c.bf16 %v494_v23, %v493_v22 }
 0x105   : > { %v1863_v63 = vpop.permute.xlu1 %702 }
 0x106   : > { %1348 = vmatprep.subr.bf16.mxu1 %v499_v25  ;;  %v1861_v62 = vpop.permute.xlu0 %697 }
 0x107   : > { %1349 = vmatpush3.bf16.msra.mxu1 %v499_v25 }
 0x108   : > { %1350 = vmatprep.subr.bf16.mxu1 %v500_v24 }
 0x109   : > { %v623_v4 = vpop.permute.xlu1 %622 }
 0x10a   : > { %v618_v0 = vpop.permute.xlu0 %617 }
 0x10b   : > { %1351 = vmatpush3.bf16.msra.mxu1 %v500_v24 }
 0x10d   : > { %v1869_v16 = vpop.permute.xlu1 %712 }
 0x10e   : > { %1353 = vmatmul.mubr.msk.bf16.vlgmr.msra.gmra.mrb[0].mxu1 %vm805_vm2, %v1432_v26  ;;  %v1865_v12 = vpop.permute.xlu0 %707 }
 0x10f   : > { %1356 = vmatprep.mubr.msk.bf16.mxu1 %vm805_vm2, %v1433_v27 }
 0x112   : > { %v628_v25 = vpop.permute.xlu0 %627 }
 0x116   : > { %1357 = vmatmul.mubr.msk.bf16.gmra.mrb[4].mxu1 %vm805_vm2, %v1434_v28 }
 0x117   : > { %1360 = vmatprep.mubr.msk.bf16.mxu1 %vm805_vm2, %v1435_v29  ;;  %v633_v29 = vpop.permute.xlu1 %632 }
 0x11e   : > { %1361 = vmatmul.mubr.msk.bf16.gmra.mrb[8].mxu1 %vm805_vm2, %v1436_v30 }
 0x11f   : > { %1364 = vmatprep.mubr.msk.bf16.mxu1 %vm805_vm2, %v1437_v31 }
 0x126   : > { %1365 = vmatmul.mubr.msk.bf16.gmra.mrb[12].mxu1 %vm805_vm2, %v1438_v32 }
 0x127   : > { %1368 = vmatprep.mubr.msk.bf16.mxu1 %vm805_vm2, %v1439_v33 }
 0x12e   : > { %1369 = vmatmul.mubr.msk.bf16.gmra.mrb[16].mxu1 %vm805_vm2, %v1440_v34 }
 0x12f   : > { %1372 = vmatprep.mubr.msk.bf16.mxu1 %vm805_vm2, %v1441_v35 }
 0x136   : > { %1373 = vmatmul.mubr.msk.bf16.gmra.mrb[20].mxu1 %vm805_vm2, %v1442_v36 }
 0x137   : > { %1376 = vmatprep.mubr.msk.bf16.mxu1 %vm805_vm2, %v1443_v37  ;;  %v1877_v37 = vpop.permute.xlu0 %717 }
 0x13e   : > { %1377 = vmatmul.mubr.msk.bf16.gmra.mrb[24].mxu1 %vm805_vm2, %v1444_v38 }
 0x13f   : > { %1380 = vmatprep.mubr.msk.bf16.mxu1 %vm805_vm2, %v1445_v39 }
 0x146   : > { %1381 = vmatmul.mubr.msk.bf16.gmra.mrb[28].mxu1 %vm805_vm2, %v1446_v40 }
 0x1e1   : > { %v1354_v1 = vpop.f32.mrb[0].mxu1 }
 0x1e2   : > { %v897_v2 = vadd.f32 %v1354_v1, %v578_v48  ;;  %v888_v3 = vpop.f32.mrb[1].mxu1 }
 0x1e3   : > { %v889_v5 = vadd.f32 %v888_v3, %v568_v43  ;;  %v1355_v6 = vpop.f32.mrb[2].mxu1 }
 0x1e4   : > { %v900_v7 = vadd.f32 %v1355_v6, %v583_v49  ;;  %v891_v8 = vpop.f32.mrb[3].mxu1  ;;  %v1017_v10 = vmax.f32 %v897_v2, 0.0 }
 0x1e5   : > { %v892_v9 = vadd.f32 %v891_v8, %v573_v44  ;;  %v1015_v13 = vmax.f32 %v889_v5, 0.0  ;;  %v1879_v44 = vpop.permute.xlu1 %722 }
 0x1e6   : > { %v1018_v11 = vmax.f32 %v900_v7, 0.0 }
 0x1e7   : > { %v1016_v14 = vmax.f32 %v892_v9, 0.0 }
 0x1e8   : > { %v1867_v15 = vpack.c.bf16 %v1018_v11, %v1017_v10 }
 0x1e9   : > { %v1871_v17 = vpack.c.bf16 %v1016_v14, %v1015_v13  ;;  %v1358_v18 = vpop.f32.mrb[4].mxu1  ;;  %v643_v5 = vpop.permute.xlu1 %642 }
 0x1ea   : > { %v913_v19 = vadd.f32 %v1358_v18, %v598_v56  ;;  %v904_v20 = vpop.f32.mrb[5].mxu1 }
 0x1eb   : > { %v905_v21 = vadd.f32 %v904_v20, %v588_v52  ;;  %v1359_v22 = vpop.f32.mrb[6].mxu1 }
 0x1ec   : > { %v916_v23 = vadd.f32 %v1359_v22, %v603_v57  ;;  %v907_v24 = vpop.f32.mrb[7].mxu1  ;;  %v1021_v27 = vmax.f32 %v913_v19, 0.0  ;;  %v638_v57 = vpop.permute.xlu0 %637 }
 0x1ed   : > { %v908_v26 = vadd.f32 %v907_v24, %v593_v53  ;;  %v1019_v30 = vmax.f32 %v905_v21, 0.0 }
 0x1ee   : > { %v1022_v28 = vmax.f32 %v916_v23, 0.0 }
 0x1ef   : > { %v1020_v31 = vmax.f32 %v908_v26, 0.0 }
 0x1f0   : > { %v1873_v32 = vpack.c.bf16 %v1022_v28, %v1021_v27 }
 0x1f1   : > { %v1875_v33 = vpack.c.bf16 %v1020_v31, %v1019_v30  ;;  %v1362_v34 = vpop.f32.mrb[8].mxu1 }
 0x1f2   : > { %v929_v35 = vadd.f32 %v1362_v34, %v618_v0  ;;  %v920_v36 = vpop.f32.mrb[9].mxu1 }
 0x1f3   : > { %v921_v38 = vadd.f32 %v920_v36, %v608_v60  ;;  %v1363_v39 = vpop.f32.mrb[10].mxu1 }
 0x1f4   : > { %v932_v40 = vadd.f32 %v1363_v39, %v623_v4  ;;  %v923_v43 = vpop.f32.mrb[11].mxu1  ;;  %v1025_v48 = vmax.f32 %v929_v35, 0.0 }
 0x1f5   : > { %v924_v45 = vadd.f32 %v923_v43, %v613_v61  ;;  %v1023_v52 = vmax.f32 %v921_v38, 0.0 }
 0x1f6   : > { %v1026_v49 = vmax.f32 %v932_v40, 0.0 }
 0x1f7   : > { %v1024_v53 = vmax.f32 %v924_v45, 0.0 }
 0x1f8   : > { %v1881_v56 = vpack.c.bf16 %v1026_v49, %v1025_v48 }
 0x1f9   : > { %v1883_v1 = vpack.c.bf16 %v1024_v53, %v1023_v52  ;;  %v1366_v0 = vpop.f32.mrb[12].mxu1 }
 0x1fa   : > { %v945_v2 = vadd.f32 %v1366_v0, %v638_v57  ;;  %v936_v3 = vpop.f32.mrb[13].mxu1 }
 0x1fb   : > { %v937_v60 = vadd.f32 %v936_v3, %v628_v25  ;;  %v1367_v6 = vpop.f32.mrb[14].mxu1 }
 0x1fc   : > { %v948_v4 = vadd.f32 %v1367_v6, %v643_v5  ;;  %v939_v7 = vpop.f32.mrb[15].mxu1  ;;  %v1029_v9 = vmax.f32 %v945_v2, 0.0 }
 0x1fd   : > { %v940_v8 = vadd.f32 %v939_v7, %v633_v29  ;;  %v1027_v10 = vmax.f32 %v937_v60, 0.0 }
 0x1fe   : > { %v1030_v61 = vmax.f32 %v948_v4, 0.0 }
 0x1ff   : > { %v1028_v11 = vmax.f32 %v940_v8, 0.0 }
 0x200   : > { %v1885_v13 = vpack.c.bf16 %v1030_v61, %v1029_v9 }
 0x201   : > { %v1887_v14 = vpack.c.bf16 %v1028_v11, %v1027_v10  ;;  %v1370_v18 = vpop.f32.mrb[16].mxu1 }
 0x202   : > { %v961_v19 = vadd.f32 %v1370_v18, %v1845_v46  ;;  %v952_v20 = vpop.f32.mrb[17].mxu1 }
 0x203   : > { %v953_v21 = vadd.f32 %v952_v20, %v1838_v41  ;;  %v1371_v22 = vpop.f32.mrb[18].mxu1 }
 0x204   : > { %v964_v23 = vadd.f32 %v1371_v22, %v1847_v47  ;;  %v955_v24 = vpop.f32.mrb[19].mxu1  ;;  %v1033_v26 = vmax.f32 %v961_v19, 0.0  ;;  %v1075_v19 = vpop.permute.xlu1 %1074 }
 0x205   : > { %v956_v25 = vadd.f32 %v955_v24, %v1840_v42  ;;  %v1031_v28 = vmax.f32 %v953_v21, 0.0 }
 0x206   : > { %v1034_v27 = vmax.f32 %v964_v23, 0.0 }
 0x207   : > { %v1032_v29 = vmax.f32 %v956_v25, 0.0 }
 0x208   : > { %v1056_v30 = vpack.c.bf16 %v1034_v27, %v1033_v26  ;;  %v1140_v25 = vpop.permute.xlu1 %1139 }
 0x209   : > { %v1055_v31 = vpack.c.bf16 %v1032_v29, %v1031_v28  ;;  %v1374_v34 = vpop.f32.mrb[20].mxu1  ;;  %v1157_v28 = vlaneseq }
 0x20a   : > { %v977_v35 = vadd.f32 %v1374_v34, %v1853_v54  ;;  %v968_v36 = vpop.f32.mrb[21].mxu1 }
 0x20b   : > { %v969_v46 = vadd.f32 %v968_v36, %v1849_v50  ;;  %v1375_v38 = vpop.f32.mrb[22].mxu1  ;;  %1312 = vmatprep.subr.bf16.mxu0 %v1055_v31 }
 0x20c   : > { %v980_v41 = vadd.f32 %v1375_v38, %v1855_v55  ;;  %v971_v47 = vpop.f32.mrb[23].mxu1  ;;  %1313 = vmatpush3.bf16.msra.mxu0 %v1871_v17  ;;  %v1037_v39 = vmax.f32 %v977_v35, 0.0 }
 0x20d   : > { %v972_v42 = vadd.f32 %v971_v47, %v1851_v51  ;;  %1314 = vmatprep.subr.bf16.mxu0 %v1056_v30  ;;  %v1035_v43 = vmax.f32 %v969_v46, 0.0  ;;  %v1158_v30 = vshrl.u32 %v1157_v28, 7 }
 0x20e   : > { %v1038_v40 = vmax.f32 %v980_v41, 0.0 }
 0x20f   : > { %v1036_v45 = vmax.f32 %v972_v42, 0.0  ;;  %v1159_v35 = vsub.s32 0, %v1158_v30 }
 0x210   : > { %v1058_v48 = vpack.c.bf16 %v1038_v40, %v1037_v39  ;;  %1315 = vmatpush3.bf16.msra.mxu0 %v1867_v15 }
 0x211   : > { %v1057_v54 = vpack.c.bf16 %v1036_v45, %v1035_v43  ;;  %v1378_v49 = vpop.f32.mrb[24].mxu1 }
 0x212   : > { %v993_v50 = vadd.f32 %v1378_v49, %v1861_v62  ;;  %v984_v52 = vpop.f32.mrb[25].mxu1 }
 0x213   : > { %v985_v55 = vadd.f32 %v984_v52, %v1857_v58  ;;  %v1379_v53 = vpop.f32.mrb[26].mxu1  ;;  %1316 = vmatprep.subr.bf16.mxu0 %v1057_v54 }
 0x214   : > { %v996_v17 = vadd.f32 %v1379_v53, %v1863_v63  ;;  %v987_v51 = vpop.f32.mrb[27].mxu1  ;;  %1317 = vmatpush3.bf16.msra.mxu0 %v1875_v33  ;;  %v1041_v0 = vmax.f32 %v993_v50, 0.0 }
 0x215   : > { %v988_v57 = vadd.f32 %v987_v51, %v1859_v59  ;;  %1318 = vmatprep.subr.bf16.mxu0 %v1058_v48  ;;  %v1039_v15 = vmax.f32 %v985_v55, 0.0 }
 0x216   : > { %v1042_v2 = vmax.f32 %v996_v17, 0.0 }
 0x217   : > { %v1040_v3 = vmax.f32 %v988_v57, 0.0 }
 0x218   : > { %v1060_v5 = vpack.c.bf16 %v1042_v2, %v1041_v0  ;;  %1319 = vmatpush3.bf16.msra.mxu0 %v1873_v32 }
 0x219   : > { %v1059_v62 = vpack.c.bf16 %v1040_v3, %v1039_v15  ;;  %v1382_v60 = vpop.f32.mrb[28].mxu1 }
 0x21a   : > { %v1009_v58 = vadd.f32 %v1382_v60, %v1877_v37  ;;  %v1000_v6 = vpop.f32.mrb[29].mxu1 }
 0x21b   : > { %v1001_v63 = vadd.f32 %v1000_v6, %v1865_v12  ;;  %v1383_v4 = vpop.f32.mrb[30].mxu1  ;;  %1320 = vmatprep.subr.bf16.mxu0 %v1059_v62  ;;  %v1447_v12 = vld [vmem:[%s1968_s5] ss:$8 sps:$4 sm:$0xff]  }
 0x21c   : > { %v1012_v33 = vadd.f32 %v1383_v4, %v1879_v44  ;;  %v1003_v59 = vpop.f32.mrb[31].mxu1  ;;  %1321 = vmatpush3.bf16.msra.mxu0 %v1883_v1  ;;  %v1045_v8 = vmax.f32 %v1009_v58, 0.0  ;;  %v1070_v1 = vpop.permute.xlu0 %1069 }
 0x21d   : > { %v1004_v7 = vadd.f32 %v1003_v59, %v1869_v16  ;;  %1322 = vmatprep.subr.bf16.mxu0 %v1060_v5  ;;  %v1043_v32 = vmax.f32 %v1001_v63, 0.0 }
 0x21e   : > { %v1046_v9 = vmax.f32 %v1012_v33, 0.0 }
 0x21f   : > { %v1044_v61 = vmax.f32 %v1004_v7, 0.0 }
 0x220   : > { %v1062_v10 = vpack.c.bf16 %v1046_v9, %v1045_v8  ;;  %1323 = vmatpush3.bf16.msra.mxu0 %v1881_v56  ;;  %v1135_v24 = vpop.permute.xlu0 %1134 }
 0x221   : > { %v1061_v37 = vpack.c.bf16 %v1044_v61, %v1043_v32 }
 0x223   : > { %1324 = vmatprep.subr.bf16.mxu0 %v1061_v37 }
 0x224   : > { %1325 = vmatpush3.bf16.msra.mxu0 %v1887_v14  ;;  %v1155_v46 = vpop.permute.xlu0 %1154 }
 0x225   : > { %1326 = vmatprep.subr.bf16.mxu0 %v1062_v10  ;;  %v1160_v41 = vrot.slane %v1155_v46, %v1159_v35 }
 0x228   : > { %1327 = vmatpush3.bf16.msra.mxu0 %v1885_v13 }
 0x22b   : > { %1120 = vmatmul.mubr.bf16.vlgmr.msra.gmra.mrb[8].mxu0 %v1447_v12 }
 0x2fe   : > { %v1328_v16 = vpop.f32.mrb[8].mxu0 }
 0x2ff   : > { %v1329_v44 = vpop.f32.mrb[9].mxu0 }
 0x300   : > { %v1330_v11 = vadd.f32 %v1329_v44, %v1328_v16  ;;  %v1331_v18 = vpop.f32.mrb[10].mxu0 }
 0x301   : > { %v1332_v20 = vpop.f32.mrb[11].mxu0 }
 0x302   : > { %v1122_v56 = vadd.f32 %v1330_v11, %v1070_v1  ;;  %v1333_v21 = vadd.f32 %v1332_v20, %v1331_v18 }
 0x304   : > { %v1128_v22 = vmax.f32 %v1122_v56, 0.0  ;;  %v1125_v23 = vadd.f32 %v1333_v21, %v1075_v19 }
 0x306   : > { %v1129_v14 = vmax.f32 %v1125_v23, 0.0  ;;  %v1142_v26 = vmul.f32 %v1135_v24, %v1128_v22 }
 0x308   : > { %v1143_v27 = vmul.f32 %v1140_v25, %v1129_v14 }
 0x30a   : > { %v1144_v29 = vadd.f32 %v1143_v27, %v1142_v26 }
 0x30c   : > { %v1145_v13 = vrot.slane %v1144_v29, 4 }
 0x30e   : > { %v1146_v31 = vadd.f32 %v1145_v13, %v1144_v29 }
 0x310   : > { %v1147_v34 = vrot.slane %v1146_v31, 2 }
 0x312   : > { %v1148_v36 = vadd.f32 %v1147_v34, %v1146_v31 }
 0x314   : > { %v1149_v38 = vrot.slane %v1148_v36, 1 }
 0x316   : > { %v1150_v47 = vadd.f32 %v1149_v38, %v1148_v36 }
 0x318   : > { %v1161_v42 = vadd.f32 %v1160_v41, %v1150_v47 }
 0x31a   : > { %v1162_v39 = vsub.f32 0.0, %v1161_v42 }
 0x31c   : > { %v1163_v40 = vmul.f32 1.442695, %v1162_v39 }
 0x31e   : > { %1450 = vpow2.f32 %v1163_v40 }
 0x328   : > { %v1451_v43 = vpop.eup %1450 }
 0x329   : > { %v1165_v45 = vadd.f32 1.0, %v1451_v43 }
 0x32b   : > { %1452 = vrcp.f32 %v1165_v45 }
 0x335   : > { %v1453_v48 = vpop.eup %1452 }
 0x336   : > { %1168 = vst [vmem:[%s324_s10] sm:$0x1] %v1453_v48 }
 0x337   : > { %1467 = shalt.err (!%p1464_p3)
}
 0x338   : > { %s1468_s28 = scalar_lea.hbm %s1921_s22, 16  ;;  %s1472_s30 = scalar_lea.hbm %s1972_s9, 48 }
 0x339   : > { %p1469_p4 = scmp.ne.s32.totalorder %s1921_s22, %s1468_s28  ;;  %p1473_p9 = scmp.lt.u32.totalorder %s1921_s22, %s1972_s9 }
 0x33a   : > { %p1474_p10 = scmp.lt.u32.totalorder %s1472_s30, %s1468_s28  ;;  %p1476_p12 = scmp.lt.u32.totalorder %s1468_s28, %s1921_s22 }
 0x33b   : > { %p1470_p7 = pnand %p1469_p4, %p1611_p5 }
 0x33c   : > { %p1475_p11 = por %p1474_p10, %p1473_p9 }
 0x33d   : > { %p1471_p8 = pneg %p1470_p7 }
 0x33e   : > { %p1477_p13 = por %p1476_p12, %p1475_p11 }
 0x340   : > { %p1478_p0 = pnand %p1477_p13, %p1471_p8 }
 0x342   : > { %1481 = shalt.err (!%p1478_p0)
}
 0x343   : > { %1385 = dma.vmem_to_hbm [thread:$0]  (%p1611_p5), %s1923_s15, 16, %s1921_s22, %s1170_s23  }
 0x344 PF: > { %p1391_p1 = scmp.ge.s32.totalorder %s1516_s14, 2  ;;  %s1194_s18 = sand.u32 1, %s1504_s11  }
 0x345   : > { %s1195_s24 = scalar_lea.sflag [#allocation4], %s1194_s18 }
 0x346   : > { %p1388_p2 = pnand %p1391_p1, %p1615_p6 }
 0x348   : > { %1499 = dma.done.wait (!%p1388_p2), %s1195_s24, 16  }
 0x349   : > { %1501 = vsyncadd (!%p1388_p2), %s1195_s24, 4294967280  ;;  %p21_p3 = scmp.ge.s32.totalorder %s1598_s16, 5   ;;  %s1975_s11 = smov %s1508_s12 }
 0x34a   : > { %s1976_s12 = smov %s1512_s13  ;;  %s1977_s13 = smov %s1609_s19 }
 0x34b   : > { %s1978_s14 = smov %s1598_s16  ;;  %23 = sbr.rel (!%p21_p3) target bundleno = 6 (0x6), region = 91 }
 0x352   :  { %1199 = vsyncpa [#allocation4], 1 }
 0x353   :  { %1201 = vsyncpa [#allocation4 + $0x1], 1 }

</bundles_post_ra>
